<compile_context>
chip_gen: v7x
topology: tpu7x:2x2x1
jax: 0.10.0
libtpu: 0.0.40
codegen_flags: <defaults>
</compile_context>

<pallas_src>
import jax
import jax.numpy as jnp
from jax.experimental import pallas as pl
from jax.experimental.pallas import tpu as pltpu


def _global_cond_mlp_kernel(x_ref, gh_ref, w1x_ref, w2_ref, b2_ref, o_ref):
    # x_ref : (NB, TT, Dp)  input row tile (possibly several packed batches)
    # gh_ref: (NB, 1,  Dp)  g @ W1[D:] + b1 per packed batch, f32
    # w1x   : (Dp, Dp)      W1[:D]  (compute dtype, e.g. bf16)
    # w2    : (Dp, Dp)      W2      (compute dtype)
    # b2    : (1, Dp)       f32
    nb, tt, dp = x_ref.shape
    x = x_ref[...].reshape(nb * tt, dp).astype(w1x_ref.dtype)

    # Linear1 on the virtual concat (g-path pre-folded into gh) + ReLU.
    h = jnp.dot(x, w1x_ref[...], preferred_element_type=jnp.float32)
    h = jnp.maximum(h.reshape(nb, tt, dp) + gh_ref[...], 0.0)

    # Linear2.
    h2 = h.reshape(nb * tt, dp).astype(w2_ref.dtype)
    y = jnp.dot(h2, w2_ref[...], preferred_element_type=jnp.float32) + b2_ref[...]
    o_ref[...] = y.reshape(nb, tt, dp).astype(o_ref.dtype)


def _vmem_capacity_bytes():
    try:
        return int(pltpu.get_tpu_info().vmem_capacity_bytes)
    except Exception:
        return 64 * 1024 * 1024  # conservative fallback (v7x per-TensorCore)


def global_conditioning_mlp(x, g, w1, b1, w2, b2, *,
                            compute_dtype=jnp.bfloat16, tile_t=None):
    """x: (B, T, D), g: (B, D); w1: (2D, D), b1: (D,), w2: (D, D), b2: (D,).

    Weights are stored as (in_features, out_features): y = in @ W + b.
    """
    B, T, D = x.shape
    assert g.shape == (B, D)
    assert w1.shape == (2 * D, D) and w2.shape == (D, D)
    assert b1.shape == (D,) and b2.shape == (D,)

    vmem_cap = _vmem_capacity_bytes()
    if tile_t is None:
        tile_t = 512 if vmem_cap >= 96 * 1024 * 1024 else 256

    # ---- Hoist the g path out of the kernel (one small batched XLA matmul).
    gh = (g.astype(jnp.float32) @ w1[D:, :].astype(jnp.float32)
          + b1.astype(jnp.float32)[None, :])                       # (B, D)
    w1x = w1[:D, :]

    # ---- Lane axis: pad only when it buys MXU alignment (D >= 128, misaligned).
    Dp = pl.cdiv(D, 128) * 128 if (D >= 128 and D % 128 != 0) else D
    pad_d = Dp - D

    if pad_d:
        x_p = jnp.pad(x, ((0, 0), (0, 0), (0, pad_d)))
        gh_p = jnp.pad(gh, ((0, 0), (0, pad_d)))
        w1x_p = jnp.pad(w1x, ((0, pad_d), (0, pad_d)))
        w2_p = jnp.pad(w2, ((0, pad_d), (0, pad_d)))
        b2_p = jnp.pad(b2, ((0, pad_d),))
    else:
        x_p, gh_p, w1x_p, w2_p, b2_p = x, gh, w1x, w2, b2

    gh_p = gh_p.reshape(B, 1, Dp).astype(jnp.float32)
    b2_p = b2_p.reshape(1, Dp).astype(jnp.float32)
    w1x_c = w1x_p.astype(compute_dtype)   # cast once, fused with the pad
    w2_c = w2_p.astype(compute_dtype)

    # ---- Row tiling: balanced T tiles; pack batches when T is small.
    if T >= tile_t:
        nt = pl.cdiv(T, tile_t)
        TT = pl.cdiv(pl.cdiv(T, nt), 8) * 8        # balanced, sublane-aligned
        NB = 1
    else:
        TT = pl.cdiv(T, 8) * 8                     # whole T in one tile
        NB = max(1, min(B, tile_t // TT))

    # Keep >= 2 grid steps when possible (both v7x TensorCores get work).
    if pl.cdiv(B, NB) * pl.cdiv(T, TT) < 2:
        if NB > 1:
            NB = pl.cdiv(NB, 2)
        elif T > 8:
            TT = max(8, pl.cdiv(pl.cdiv(T, 2), 8) * 8)

    # ---- VMEM budget derived from actual buffer sizes; shrink tile to fit.
    x_isz = jnp.dtype(x.dtype).itemsize
    c_isz = jnp.dtype(compute_dtype).itemsize

    def est_vmem(nb, tt):
        blk = nb * tt * Dp
        return (2 * blk * x_isz            # x tile, double-buffered
                + 2 * blk * x_isz          # out tile, double-buffered
                + 2 * nb * Dp * 4          # gh
                + 2 * Dp * Dp * c_isz      # weights, single-buffered
                + Dp * 4                   # b2
                + 3 * blk * 4)             # h / cast intermediates headroom

    budget = int(vmem_cap * 0.85)
    while est_vmem(NB, TT) > budget and (TT > 8 or NB > 1):
        if TT > 8:
            TT = max(8, pl.cdiv(pl.cdiv(TT, 2), 8) * 8)
        else:
            NB = max(1, NB // 2)
    # TODO(synk): add a K/N weight-tiling path (third 'arbitrary' grid axis with a
    # VMEM accumulator) for D so large that the resident 2*Dp^2 weights alone
    # exceed the VMEM budget (Dp >~ 3400 in bf16 on v7x).

    grid = (pl.cdiv(B, NB), pl.cdiv(T, TT))
    est = est_vmem(NB, TT)
    vmem_limit = int(min(vmem_cap - (4 << 20), max(2 * est, 32 << 20)))

    rows = grid[0] * NB * grid[1] * TT
    flops = 4 * rows * Dp * Dp
    bytes_accessed = int(2 * x_isz * B * T * Dp + 2 * Dp * Dp * c_isz
                         + B * Dp * 4 + Dp * 4)

    out_p = pl.pallas_call(
        _global_cond_mlp_kernel,
        out_shape=jax.ShapeDtypeStruct((B, T, Dp), x.dtype),
        grid_spec=pltpu.PrefetchScalarGridSpec(
            num_scalar_prefetch=0,
            grid=grid,
            in_specs=[
                pl.BlockSpec((NB, TT, Dp), lambda b, t: (b, t, 0)),   # x row tile
                pl.BlockSpec((NB, 1, Dp), lambda b, t: (b, 0, 0)),    # gh per batch
                pl.BlockSpec((Dp, Dp), lambda b, t: (0, 0),
                             pipeline_mode=pl.Buffered(1)),           # W1[:D] invariant
                pl.BlockSpec((Dp, Dp), lambda b, t: (0, 0),
                             pipeline_mode=pl.Buffered(1)),           # W2 invariant
                pl.BlockSpec((1, Dp), lambda b, t: (0, 0),
                             pipeline_mode=pl.Buffered(1)),           # b2 invariant
            ],
            out_specs=pl.BlockSpec((NB, TT, Dp), lambda b, t: (b, t, 0)),
        ),
        compiler_params=pltpu.CompilerParams(
            dimension_semantics=("parallel", "parallel"),
            vmem_limit_bytes=vmem_limit,
        ),
        cost_estimate=pl.CostEstimate(
            flops=flops, transcendentals=0, bytes_accessed=bytes_accessed),
    )(x_p, gh_p, w1x_c, w2_c, b2_p)

    return out_p[..., :D] if pad_d else out_p


def _reference(x, g, w1, b1, w2, b2):
    B, T, D = x.shape
    g_expanded = jnp.broadcast_to(g[:, None, :], (B, T, D))
    cat = jnp.concatenate([x, g_expanded], axis=-1)
    h = jnp.maximum(cat @ w1 + b1, 0.0)
    return h @ w2 + b2


def _make_inputs(B, T, D, key):
    kx, kg, kw1, kb1, kw2, kb2 = jax.random.split(key, 6)
    x = jax.random.normal(kx, (B, T, D), dtype=jnp.float32)
    g = jax.random.normal(kg, (B, D), dtype=jnp.float32)
    # nn.Linear(dim*2, dim) / nn.Linear(dim, dim) params, stored (in, out).
    w1 = jax.random.normal(kw1, (2 * D, D), dtype=jnp.float32) * 0.05
    b1 = jax.random.normal(kb1, (D,), dtype=jnp.float32) * 0.05
    w2 = jax.random.normal(kw2, (D, D), dtype=jnp.float32) * 0.05
    b2 = jax.random.normal(kb2, (D,), dtype=jnp.float32) * 0.05
    return x, g, w1, b1, w2, b2


if __name__ == "__main__":
    # --- Primary small case: B=2, T=8, D=32.
    x, g, w1, b1, w2, b2 = _make_inputs(2, 8, 32, jax.random.PRNGKey(0))
    ref = _reference(x, g, w1, b1, w2, b2)

    # Exact-parity check with f32 compute.
    out_f32 = jax.block_until_ready(
        global_conditioning_mlp(x, g, w1, b1, w2, b2, compute_dtype=jnp.float32))
    assert out_f32.shape == ref.shape
    assert jnp.allclose(out_f32, ref, atol=1e-4, rtol=1e-4), "f32 mismatch"

    # Default bf16-MXU path (f32 accumulation) — loosened tolerance.
    out_bf16 = jax.block_until_ready(global_conditioning_mlp(x, g, w1, b1, w2, b2))
    assert jnp.allclose(out_bf16, ref, atol=5e-2, rtol=5e-2), "bf16 mismatch"

    # --- Unaligned T (OOB-masked last tile) and multi-step grid.
    x, g, w1, b1, w2, b2 = _make_inputs(3, 300, 64, jax.random.PRNGKey(1))
    out = jax.block_until_ready(global_conditioning_mlp(x, g, w1, b1, w2, b2))
    ref = _reference(x, g, w1, b1, w2, b2)
    assert out.shape == ref.shape
    assert jnp.allclose(out, ref, atol=5e-2, rtol=5e-2), "T=300 mismatch"

    # --- Lane-padding path (D >= 128 and not a multiple of 128).
    x, g, w1, b1, w2, b2 = _make_inputs(2, 16, 192, jax.random.PRNGKey(2))
    out = jax.block_until_ready(global_conditioning_mlp(x, g, w1, b1, w2, b2))
    ref = _reference(x, g, w1, b1, w2, b2)
    assert out.shape == ref.shape
    assert jnp.allclose(out, ref, atol=5e-2, rtol=5e-2), "D=192 mismatch"

    print("KERNEL_OK")
</pallas_src>

<mosaic_0001>
module attributes {stable_mosaic.version = 11 : i64} {
  func.func @_global_cond_mlp_kernel(%arg0: i32, %arg1: i32, %arg2: memref<1x8x32xf32, #tpu.memory_space<vmem>>, %arg3: memref<1x1x32xf32, #tpu.memory_space<vmem>>, %arg4: memref<32x32xf32, #tpu.memory_space<vmem>>, %arg5: memref<32x32xf32, #tpu.memory_space<vmem>>, %arg6: memref<1x32xf32, #tpu.memory_space<vmem>>, %arg7: memref<1x8x32xf32, #tpu.memory_space<vmem>>) attributes {dimension_semantics = [#tpu.dimension_semantics<parallel>, #tpu.dimension_semantics<parallel>], iteration_bounds = array<i64: 2, 1>, scalar_prefetch = 0 : i64, scratch_operands = 0 : i64, tpu.core_type = #tpu.core_type<tc>, window_params = [{transform_indices = @transform_0, window_bounds = array<i64: 1, 8, 32>}, {transform_indices = @transform_1, window_bounds = array<i64: 1, 1, 32>}, {pipeline_mode = #tpu.pipeline_mode<synchronous>, transform_indices = @transform_2, window_bounds = array<i64: 32, 32>}, {pipeline_mode = #tpu.pipeline_mode<synchronous>, transform_indices = @transform_3, window_bounds = array<i64: 32, 32>}, {pipeline_mode = #tpu.pipeline_mode<synchronous>, transform_indices = @transform_4, window_bounds = array<i64: 1, 32>}, {transform_indices = @transform_5, window_bounds = array<i64: 1, 8, 32>}]} {
    %c0 = arith.constant 0 : index
    %c0_0 = arith.constant 0 : index
    %c0_1 = arith.constant 0 : index
    %0 = vector.load %arg2[%c0, %c0_0, %c0_1] : memref<1x8x32xf32, #tpu.memory_space<vmem>>, vector<1x8x32xf32>
    %1 = vector.shape_cast %0 : vector<1x8x32xf32> to vector<8x32xf32>
    %c0_2 = arith.constant 0 : index
    %c0_3 = arith.constant 0 : index
    %2 = vector.load %arg4[%c0_2, %c0_3] : memref<32x32xf32, #tpu.memory_space<vmem>>, vector<32x32xf32>
    %cst = arith.constant dense<0.000000e+00> : vector<8x32xf32>
    %3 = tpu.matmul %1, %2, %cst {dimension_numbers = #tpu.dot_dimension_numbers<[1], [0], [0], [1], [0, 0, 1, 1], [], []>} : vector<8x32xf32>, vector<32x32xf32>, vector<8x32xf32> -> vector<8x32xf32>
    %4 = vector.shape_cast %3 : vector<8x32xf32> to vector<1x8x32xf32>
    %c0_4 = arith.constant 0 : index
    %c0_5 = arith.constant 0 : index
    %c0_6 = arith.constant 0 : index
    %5 = vector.load %arg3[%c0_4, %c0_5, %c0_6] : memref<1x1x32xf32, #tpu.memory_space<vmem>>, vector<1x1x32xf32>
    %6 = vector.broadcast %5 : vector<1x1x32xf32> to vector<1x8x32xf32>
    %7 = arith.addf %4, %6 : vector<1x8x32xf32>
    %cst_7 = arith.constant 0.000000e+00 : f32
    %8 = vector.broadcast %cst_7 : f32 to vector<1x8x32xf32>
    %9 = arith.maximumf %7, %8 : vector<1x8x32xf32>
    %10 = vector.shape_cast %9 : vector<1x8x32xf32> to vector<8x32xf32>
    %c0_8 = arith.constant 0 : index
    %c0_9 = arith.constant 0 : index
    %11 = vector.load %arg5[%c0_8, %c0_9] : memref<32x32xf32, #tpu.memory_space<vmem>>, vector<32x32xf32>
    %cst_10 = arith.constant dense<0.000000e+00> : vector<8x32xf32>
    %12 = tpu.matmul %10, %11, %cst_10 {dimension_numbers = #tpu.dot_dimension_numbers<[1], [0], [0], [1], [0, 0, 1, 1], [], []>} : vector<8x32xf32>, vector<32x32xf32>, vector<8x32xf32> -> vector<8x32xf32>
    %c0_11 = arith.constant 0 : index
    %c0_12 = arith.constant 0 : index
    %13 = vector.load %arg6[%c0_11, %c0_12] : memref<1x32xf32, #tpu.memory_space<vmem>>, vector<1x32xf32>
    %14 = vector.broadcast %13 : vector<1x32xf32> to vector<8x32xf32>
    %15 = arith.addf %12, %14 : vector<8x32xf32>
    %16 = vector.shape_cast %15 : vector<8x32xf32> to vector<1x8x32xf32>
    %c0_13 = arith.constant 0 : index
    %c0_14 = arith.constant 0 : index
    %c0_15 = arith.constant 0 : index
    %17 = vector.load %arg7[%c0_13, %c0_14, %c0_15] : memref<1x8x32xf32, #tpu.memory_space<vmem>>, vector<1x8x32xf32>
    tpu.vector_store %arg7[%c0_13, %c0_14, %c0_15], %16 {strides = array<i32>} : memref<1x8x32xf32, #tpu.memory_space<vmem>>, vector<1x8x32xf32>,
    return
  }
  func.func @transform_0(%arg0: i32, %arg1: i32) -> (i32, i32, i32) {
    %c0_i32 = arith.constant 0 : i32
    %c0_i32_0 = arith.constant 0 : i32
    return %arg0, %arg1, %c0_i32 : i32, i32, i32
  }
  func.func @transform_1(%arg0: i32, %arg1: i32) -> (i32, i32, i32) {
    %c0_i32 = arith.constant 0 : i32
    %c0_i32_0 = arith.constant 0 : i32
    %c0_i32_1 = arith.constant 0 : i32
    return %arg0, %c0_i32, %c0_i32_0 : i32, i32, i32
  }
  func.func @transform_2(%arg0: i32, %arg1: i32) -> (i32, i32) {
    %c0_i32 = arith.constant 0 : i32
    %c0_i32_0 = arith.constant 0 : i32
    %c0_i32_1 = arith.constant 0 : i32
    return %c0_i32, %c0_i32_0 : i32, i32
  }
  func.func @transform_3(%arg0: i32, %arg1: i32) -> (i32, i32) {
    %c0_i32 = arith.constant 0 : i32
    %c0_i32_0 = arith.constant 0 : i32
    %c0_i32_1 = arith.constant 0 : i32
    return %c0_i32, %c0_i32_0 : i32, i32
  }
  func.func @transform_4(%arg0: i32, %arg1: i32) -> (i32, i32) {
    %c0_i32 = arith.constant 0 : i32
    %c0_i32_0 = arith.constant 0 : i32
    %c0_i32_1 = arith.constant 0 : i32
    return %c0_i32, %c0_i32_0 : i32, i32
  }
  func.func @transform_5(%arg0: i32, %arg1: i32) -> (i32, i32, i32) {
    %c0_i32 = arith.constant 0 : i32
    %c0_i32_0 = arith.constant 0 : i32
    return %arg0, %arg1, %c0_i32 : i32, i32, i32
  }
}

</mosaic_0001>

<bundles_post_ra>
// kernel: tpu_custom_call.1
= control target key start
LH: loop header
LB: loop body
LE: loop exit
PB: predicated region body
PF: predicated region fallthrough
CT: control target
= control target key end

     0   :  { %10 = vsyncpa [#allocation3], 0  ;;  %s1227_s0 = inlined_call_operand.hbm [shape: f32[2,8,32], index: 0, kind: input, shape index: {}]   ;;  %s1228_s1 = inlined_call_operand.vmem [shape: f32[2,1,32], index: 1, kind: input, shape index: {}]   ;;  %s1229_s2 = inlined_call_operand.hbm [shape: f32[32,32], index: 2, kind: input, shape index: {}]   ;;  %s1230_s3 = inlined_call_operand.hbm [shape: f32[32,32], index: 3, kind: input, shape index: {}]   ;;  %s1231_s4 = inlined_call_operand.vmem [shape: f32[1,32], index: 4, kind: input, shape index: {}]   ;;  %s1232_s5 = inlined_call_operand.hbm [shape: f32[2,8,32], index: 5, kind: output, shape index: {}]  }
   0x1   :  { %12 = vsyncpa [#allocation3 + $0x1], 0 }
   0x2   :  { %13 = vsyncpa [#allocation6], 0 }
   0x3   :  { %14 = vsyncpa [#allocation4], 0 }
   0x4   :  { %16 = vsyncpa [#allocation4 + $0x1], 0  ;;  %s962_s18 = smov 0   ;;  %s964_s19 = smov 0  }
   0x5   :  { %s966_s20 = smov 0   ;;  %s968_s21 = smov 0  }
   0x6   :  { %s970_s22 = smov 0   ;;  %s972_s23 = smov 0  }
   0x7 LB: > { %s596_s24 = sadd.s32 4294967295, %s921_s23   ;;  %s597_s25 = sadd.s32 4294967294, %s921_s23   ;;  %s921_s23 = sphi %s972_s23, %s22_s23   ;;  %s917_s22 = sphi %s970_s22, %s1254_s22   ;;  %s913_s21 = sphi %s968_s21, %s1253_s21   ;;  %s909_s20 = sphi %s966_s20, %s1252_s20   ;;  %s905_s19 = sphi %s964_s19, %s1251_s19   ;;  %s901_s18 = sphi %s962_s18, %s1250_s18  }
   0x8   : > { %p56_p0 = scmp.ne.s32.totalorder %s905_s19, %s901_s18  ;;  %p996_p1 = scmp.eq.s32.totalorder %s596_s24, 0 }
   0x9   : > { %p1000_p2 = scmp.eq.s32.totalorder %s596_s24, 1  ;;  %p177_p3 = scmp.eq.s32.totalorder %s597_s25, 1 }
   0xa   : > { %s1237_s26 = scalar_select %p996_p1, 1, 0 }
   0xb   : > { %p1006_p4 = por %p996_p1, %p56_p0  ;;  %p598_p5 = scmp.ge.s32.totalorder %s921_s23, 1 }
   0xc   : > { %p1011_p6 = por %p177_p3, %p56_p0  ;;  %p184_p7 = scmp.lt.s32.totalorder %s921_s23, 3 }
   0xd   : > { %s1239_s28 = scalar_select %p1006_p4, 1, 0 }
   0xe   : > { %s1240_s29 = scalar_select %p1011_p6, 1, 0 }
   0xf   : > { %p1016_p8 = pnand %p598_p5, %p184_p7  ;;  %s923_s6 = smov [#allocation5]  }
  0x10   : > { %s196_s7 = sshll.u32 %s923_s6, 4  ;;  %s924_s9 = smov [#allocation7]   ;;  %s1020_s7 = int_to_ptr.vmem [resolvable:$true] %s196_s7 }
  0x11   : > { %p673_p9 = pneg %p1016_p8  ;;  %s209_s10 = sshll.u32 %s924_s9, 4  ;;  %s1031_s10 = int_to_ptr.vmem [resolvable:$true] %s209_s10 }
  0x12   : > { %s749_s13 = scalar_lea.hbm %s1229_s2, 512 }
  0x13   : > { %p1027_p11 = pnand %p673_p9, %p996_p1  ;;  %p750_p12 = scmp.ne.s32.totalorder %s1229_s2, %s749_s13 }
  0x14   : > { %p756_p5 = scmp.lt.u32.totalorder %s749_s13, %s1229_s2 }
  0x15   : > { %p751_p13 = pneg %p1027_p11 }
  0x17   : > { %p752_p0 = pnand %p751_p13, %p750_p12 }
  0x19   : > { %p753_p3 = pneg %p752_p0 }
  0x1b   : > { %p758_p7 = pnand %p756_p5, %p753_p3 }
  0x1d   : > { %761 = shalt.err (!%p758_p7)
}
  0x1e   : > { %s762_s24 = scalar_lea.vmem %s1020_s7, 512  ;;  %p770_p1 = scmp.lt.s32.totalorder %s1020_s7, %s1020_s7 }
  0x1f   : > { %p763_p9 = scmp.ne.s32.totalorder %s1020_s7, %s762_s24  ;;  %p771_p12 = scmp.lt.s32.totalorder %s762_s24, %s762_s24 }
  0x21   : > { %p765_p10 = pnand %p763_p9, %p751_p13  ;;  %p772_p0 = por %p771_p12, %p770_p1 }
  0x23   : > { %p766_p6 = pneg %p765_p10 }
  0x25   : > { %p773_p4 = pnand %p772_p0, %p766_p6 }
  0x27   : > { %776 = shalt.err (!%p773_p4)
}
  0x28   : > { %s925_s25 = smov 128   ;;  %s926_s6 = smov 8  }
  0x29   : > { %676 = dma.hbm_to_vmem [thread:$0]  (!%p1027_p11), %s1229_s2, 512, %s1020_s7, [#allocation6], %s925_s25, %s925_s25, %s926_s6  }
  0x2a   : > { %s777_s14 = scalar_lea.hbm %s1230_s3, 512 }
  0x2b   : > { %p778_p1 = scmp.ne.s32.totalorder %s1230_s3, %s777_s14  ;;  %p784_p10 = scmp.lt.u32.totalorder %s777_s14, %s1230_s3 }
  0x2d   : > { %p780_p4 = pnand %p778_p1, %p751_p13 }
  0x2f   : > { %p781_p6 = pneg %p780_p4 }
  0x31   : > { %p786_p3 = pnand %p784_p10, %p781_p6 }
  0x33   : > { %789 = shalt.err (!%p786_p3)
}
  0x34   : > { %s790_s7 = scalar_lea.vmem %s1031_s10, 512  ;;  %p798_p12 = scmp.lt.s32.totalorder %s1031_s10, %s1031_s10 }
  0x35   : > { %p791_p5 = scmp.ne.s32.totalorder %s1031_s10, %s790_s7  ;;  %p799_p0 = scmp.lt.s32.totalorder %s790_s7, %s790_s7 }
  0x37   : > { %p793_p7 = pnand %p791_p5, %p751_p13  ;;  %p800_p1 = por %p799_p0, %p798_p12 }
  0x39   : > { %p794_p9 = pneg %p793_p7 }
  0x3b   : > { %p801_p4 = pnand %p800_p1, %p794_p9 }
  0x3d   : > { %804 = shalt.err (!%p801_p4)
}
  0x3e   : > { %679 = dma.hbm_to_vmem [thread:$0]  (!%p1027_p11), %s1230_s3, 512, %s1031_s10, [#allocation6], %s925_s25, %s925_s25, %s926_s6  }
  0x3f   : > { %s34_s12 = sadd.s32 1, %s917_s22  ;;  %s43_s13 = sadd.s32 1, %s909_s20 }
  0x40   : > { %p36_p13 = scmp.ge.s32.totalorder %s34_s12, 2  ;;  %p50_p6 = scmp.ne.s32.totalorder %s909_s20, %s905_s19 }
  0x41   : > { %p51_p10 = scmp.eq.s32.totalorder %s921_s23, 0  ;;  %p690_p3 = scmp.lt.s32.totalorder %s921_s23, 2 }
  0x42   : > { %s1256_s12 = smov (%p36_p13, %s34_s12), 0  ;;  %p1095_p7 = por %p1000_p2, %p50_p6 }
  0x43   : > { %p52_p5 = por %p51_p10, %p50_p6  ;;  %s38_s14 = ssub.s32 %s917_s22, %s1256_s12 }
  0x44   : > { %s1243_s8 = scalar_select %p1095_p7, 1, 0 }
  0x45   : > { %s226_s15 = sand.u32 1, %s909_s20   ;;  %p41_p9 = scmp.eq.s32.totalorder %s38_s14, 0 }
  0x46   : > { %s602_s10 = sshll.u32 %s226_s15, 3  ;;  %s603_s25 = sshll.u32 %s917_s22, 7 }
  0x47   : > { %s1104_s6 = scalar_select %p41_p9, %s909_s20, %s43_s13  }
  0x48   : > { %s1109_s24 = scalar_lea.hbm %s1227_s0, %s603_s25  ;;  %s230_s27 = scalar_lea.vmem [#allocation2], %s602_s10 }
  0x49   : > { %s238_s7 = sshll.u32 %s230_s27, 4  ;;  %p1113_p2 = pnand %p690_p3, %p52_p5  ;;  %s1117_s7 = int_to_ptr.vmem [resolvable:$true] %s238_s7 }
  0x4a   : > { %s227_s11 = scalar_lea.sflag [#allocation3], %s226_s15  ;;  %s805_s13 = scalar_lea.hbm %s1109_s24, 128 }
  0x4b   : > { %p806_p11 = scmp.ne.s32.totalorder %s1109_s24, %s805_s13  ;;  %p807_p12 = pneg %p1113_p2 }
  0x4c   : > { %s810_s25 = scalar_lea.hbm %s1227_s0, 256  ;;  %p811_p4 = scmp.lt.u32.totalorder %s1109_s24, %s1227_s0 }
  0x4d   : > { %p808_p0 = pnand %p807_p12, %p806_p11  ;;  %p812_p13 = scmp.lt.u32.totalorder %s810_s25, %s805_s13 }
  0x4e   : > { %p814_p10 = scmp.lt.u32.totalorder %s805_s13, %s1109_s24 }
  0x4f   : > { %p809_p1 = pneg %p808_p0  ;;  %p813_p6 = por %p812_p13, %p811_p4 }
  0x51   : > { %p815_p3 = por %p814_p10, %p813_p6 }
  0x53   : > { %p816_p5 = pnand %p815_p3, %p809_p1 }
  0x55   : > { %819 = shalt.err (!%p816_p5)
}
  0x56   : > { %s820_s15 = scalar_lea.vmem %s1117_s7, 128  ;;  %s927_s27 = smov [#allocation2]  }
  0x57   : > { %p821_p9 = scmp.ne.s32.totalorder %s1117_s7, %s820_s15  ;;  %s825_s14 = sshll.u32 %s927_s27, 4  ;;  %s826_s14 = int_to_ptr.vmem [resolvable:$false] %s825_s14 }
  0x58   : > { %s827_s10 = scalar_lea.vmem %s826_s14, 256  ;;  %p828_p7 = scmp.lt.s32.totalorder %s1117_s7, %s826_s14 }
  0x59   : > { %p823_p11 = pnand %p821_p9, %p807_p12  ;;  %p829_p4 = scmp.lt.s32.totalorder %s827_s10, %s820_s15 }
  0x5b   : > { %p824_p0 = pneg %p823_p11  ;;  %p830_p13 = por %p829_p4, %p828_p7 }
  0x5d   : > { %p831_p6 = pnand %p830_p13, %p824_p0 }
  0x5f   : > { %834 = shalt.err (!%p831_p6)
}
  0x60   : > { %683 = dma.hbm_to_vmem [thread:$0]  (!%p1113_p2), %s1109_s24, 128, %s1117_s7, %s227_s11  }
  0x61   : > { %253 = sbr.rel (%p1016_p8) target bundleno = 563 (0x233), region = 40  ;;  %s1147_s13 = sand.u32 (!%p1016_p8), 1, %s905_s19  }
  0x62   : > { %s605_s25 = sshll.u32 (!%p1016_p8), %s1147_s13, 3  ;;  %s256_s16 = scalar_lea.sflag (!%p1016_p8), [#allocation3], %s1147_s13 }
  0x63   : > { %s259_s17 = scalar_lea.vmem (!%p1016_p8), [#allocation2], %s605_s25  ;;  %p1245_p7 = scmp.ne.s32.totalorder (!%p1016_p8), %s1239_s28, 0 }
  0x68   : > { %888 = dma.done.wait (%p1245_p7), %s256_s16, 128  }
  0x69   : > { %890 = vsyncadd (%p1245_p7), %s256_s16, 4294967168  ;;  %p1246_p2 = scmp.ne.s32.totalorder %s1237_s26, 0 }
  0x6b   : > { %892 = dma.done.wait (%p1246_p2), [#allocation6], 1024  }
  0x6c   : > { %894 = vsyncadd (%p1246_p2), [#allocation6], 4294966272  ;;  %v928_v0 = vmov 0.0|0.0   ;;  %vm929_vm0 = vmmov 0   ;;  %v930_v1 = vmov 0.0   ;;  %v301_v2 = vld [vmem:[#allocation5] sm:$0xff] }
  0x6d   : > { %649 = vmatprep.subr.bf16.mxu0 %v928_v0  ;;  %635 = vmatprep.mubr.msk.f32.mxu0 %vm929_vm0, %v930_v1  ;;  %v302_v3 = vld [vmem:[#allocation5 + $0x8] sm:$0xff]  ;;  %v303_v4 = vld [vmem:[#allocation5 + $0x10] sm:$0xff]  ;;  %v304_v6 = vld [vmem:[#allocation5 + $0x18] sm:$0xff]  ;;  %vm305_vm1 = vcmask 261120   ;;  %p297_p8 = scmp.lt.s32.totalorder %s913_s21, 1  ;;  %s614_s11 = sshll.u32 %s913_s21, 7 }
  0x6e   : > { %655 = vmatprep.subr.bf16.mxu1 %v928_v0  ;;  %646 = vmatprep.mubr.msk.f32.mxu1 %vm929_vm0, %v930_v1  ;;  %v650_v5 = vpack.c.bf16 %v302_v3, %v301_v2  ;;  %v388_v7 = vld [vmem:[#allocation7] sm:$0xff]  ;;  %v389_v8 = vld [vmem:[#allocation7 + $0x8] sm:$0xff]  ;;  %v653_v9 = vpack.c.bf16 %v304_v6, %v303_v4  ;;  %v300_v11 = vld [vmem:[%s259_s17] sm:$0xff]  ;;  %s296_s15 = scalar_lea.vmem [#allocation8], %s605_s25  ;;  %s1177_s16 = scalar_lea.hbm %s1232_s5, %s614_s11 }
  0x6f   : > { %v656_v10 = vpack.c.bf16 %v389_v8, %v388_v7  ;;  %v390_v12 = vld [vmem:[#allocation7 + $0x10] sm:$0xff]  ;;  %v391_v13 = vld [vmem:[#allocation7 + $0x18] sm:$0xff]  ;;  %s298_s26 = scalar_select %p297_p8, %s913_s21, 1 }
  0x70   : > { %651 = vmatpush3.bf16.msra.mxu0 %v650_v5  ;;  %v659_v14 = vpack.c.bf16 %v391_v13, %v390_v12  ;;  %v611_v20 = vld [vmem:[%s1231_s4] ss:$0 sm:$0xff]  ;;  %s488_s27 = sshll.u32 %s296_s15, 4  ;;  %s474_s17 = scalar_lea.sflag [#allocation4], %s1147_s13  ;;  %s1179_s27 = int_to_ptr.vmem [resolvable:$true] %s488_s27 }
  0x71   : > { %652 = vmatprep.subr.bf16.mxu0 %v928_v0  ;;  %657 = vmatpush3.bf16.msra.mxu1 %v656_v10  ;;  %s299_s24 = scalar_lea.vmem %s1228_s1, %s298_s26  ;;  %s835_s21 = scalar_lea.vmem %s1179_s27, 128 }
  0x72   : > { %658 = vmatprep.subr.bf16.mxu1 %v928_v0  ;;  %v610_v15 = vld [vmem:[%s299_s24] ss:$0 sm:$0xff]  ;;  %p836_p12 = scmp.ne.s32.totalorder %s1179_s27, %s835_s21  ;;  %p1247_p1 = scmp.ne.s32.totalorder %s1243_s8, 0 }
  0x73   : > { %s931_s25 = smov [#allocation8]  }
  0x74   : > { %654 = vmatpush3.bf16.msra.mxu0 %v653_v9  ;;  %p837_p10 = pnand %p836_p12, %p1247_p1  ;;  %s839_s26 = sshll.u32 %s931_s25, 4  ;;  %s840_s26 = int_to_ptr.vmem [resolvable:$false] %s839_s26 }
  0x75   : > { %660 = vmatpush3.bf16.msra.mxu1 %v659_v14  ;;  %s841_s28 = scalar_lea.vmem %s840_s26, 256  ;;  %p842_p5 = scmp.lt.s32.totalorder %s1179_s27, %s840_s26 }
  0x76   : > { %p838_p3 = pneg %p837_p10  ;;  %p843_p9 = scmp.lt.s32.totalorder %s841_s28, %s835_s21 }
  0x77   : > { %636 = vmatmul.mubr.msk.f32.vlgmr.msra.gmra.mrb[0].mxu0 %vm305_vm1, %v300_v11 }
  0x78   : > { %p844_p11 = por %p843_p9, %p842_p5 }
  0x7a   : > { %p845_p0 = pnand %p844_p11, %p838_p3 }
 0x14a   : > { %v375_v16 = vpop.f32.mrb[0].mxu0 }
 0x14b   : > { %v386_v17 = vadd.f32 %v610_v15, %v375_v16  ;;  %v637_v18 = vpop.f32.mrb[1].mxu0 }
 0x14d   : > { %v387_v19 = vmax.f32 %v386_v17, 0.0 }
 0x14f   : > { %647 = vmatmul.mubr.msk.f32.vlgmr.msra.gmra.mrb[0].mxu1 %vm305_vm1, %v387_v19 }
 0x222   : > { %v468_v21 = vpop.f32.mrb[0].mxu1 }
 0x223   : > { %v469_v22 = vadd.f32 %v611_v20, %v468_v21  ;;  %v648_v23 = vpop.f32.mrb[1].mxu1 }
 0x225   : > { %472 = vst.msk [vmem:[%s296_s15] sm:$0xff] %vm305_vm1, %v469_v22 }
 0x226   : > { %848 = shalt.err (!%p845_p0)
}
 0x227   : > { %s849_s13 = scalar_lea.hbm %s1177_s16, 128  ;;  %s853_s7 = scalar_lea.hbm %s1232_s5, 256 }
 0x228   : > { %p850_p4 = scmp.ne.s32.totalorder %s1177_s16, %s849_s13  ;;  %p854_p7 = scmp.lt.u32.totalorder %s1177_s16, %s1232_s5 }
 0x229   : > { %p855_p2 = scmp.lt.u32.totalorder %s853_s7, %s849_s13  ;;  %p857_p12 = scmp.lt.u32.totalorder %s849_s13, %s1177_s16 }
 0x22a   : > { %p851_p13 = pnand %p850_p4, %p1247_p1 }
 0x22b   : > { %p856_p8 = por %p855_p2, %p854_p7 }
 0x22c   : > { %p852_p6 = pneg %p851_p13 }
 0x22d   : > { %p858_p10 = por %p857_p12, %p856_p8 }
 0x22f   : > { %p859_p3 = pnand %p858_p10, %p852_p6 }
 0x231   : > { %862 = shalt.err (!%p859_p3)
}
 0x232   : > { %671 = dma.vmem_to_hbm [thread:$0]  (%p1247_p1), %s1179_s27, 128, %s1177_s16, %s474_s17  }
 0x233 PF: > { %s500_s15 = sand.u32 1, %s901_s18   ;;  %p1248_p5 = scmp.ne.s32.totalorder %s1240_s29, 0 }
 0x234   : > { %p1249_p9 = scmp.ge.s32.totalorder %s921_s23, 2  ;;  %s501_s14 = scalar_lea.sflag [#allocation4], %s500_s15 }
 0x236   : > { %p685_p11 = pnand %p1249_p9, %p1248_p5 }
 0x238   : > { %896 = dma.done.wait (!%p685_p11), %s501_s14, 128  }
 0x239   : > { %898 = vsyncadd (!%p685_p11), %s501_s14, 4294967168  ;;  %s22_s23 = sadd.s32 1, %s921_s23   ;;  %s1250_s18 = smov %s905_s19 }
 0x23a   : > { %p19_p0 = scmp.ge.s32.totalorder %s22_s23, 4   ;;  %s1251_s19 = smov %s909_s20 }
 0x23b   : > { %s1252_s20 = smov %s1104_s6  ;;  %s1253_s21 = smov %s917_s22 }
 0x23c   : > { %s1254_s22 = smov %s1256_s12  ;;  %21 = sbr.rel (!%p19_p0) target bundleno = 7 (0x7), region = 96 }
 0x243   :  { %506 = vsyncpa [#allocation3], 1 }
 0x244   :  { %508 = vsyncpa [#allocation3 + $0x1], 1 }
 0x245   :  { %509 = vsyncpa [#allocation6], 1 }
 0x246   :  { %510 = vsyncpa [#allocation4], 1 }
 0x247   :  { %512 = vsyncpa [#allocation4 + $0x1], 1 }

</bundles_post_ra>
